<compile_context>
chip_gen: v6e
topology: v6e:2x2x1
jax: 0.10.0
libtpu: 0.0.40
codegen_flags: <defaults>
</compile_context>

<pallas_src>
import functools

import jax
import jax.numpy as jnp
from jax.experimental import pallas as pl
from jax.experimental.pallas import tpu as pltpu


def _cdiv(a, b):
    return -(-a // b)


def _round_up(x, m):
    return ((x + m - 1) // m) * m


# ---------------------------------------------------------------------------
# Kernels
# ---------------------------------------------------------------------------
def _affine_kernel_fused(x_ref, w_ref, b_ref, o_ref):
    """Single-K-step case: no scratch accumulator, write result directly."""
    acc = jnp.dot(x_ref[...], w_ref[...], preferred_element_type=jnp.float32)
    o_ref[...] = (acc + b_ref[...]).astype(o_ref.dtype)


def _affine_kernel_acc(x_ref, w_ref, b_ref, o_ref, acc_ref):
    """Multi-K-step case: f32 VMEM accumulator, init at k==0, finalize at last k."""
    k = pl.program_id(2)

    @pl.when(k == 0)
    def _():
        acc_ref[...] = jnp.zeros_like(acc_ref)

    acc_ref[...] += jnp.dot(x_ref[...], w_ref[...],
                            preferred_element_type=jnp.float32)

    @pl.when(k == pl.num_programs(2) - 1)
    def _():
        # Epilogue (bias add + cast) kept in f32 — cheap everywhere, and v5e's
        # VPU has no native bf16 arithmetic.
        o_ref[...] = (acc_ref[...] + b_ref[...]).astype(o_ref.dtype)


# ---------------------------------------------------------------------------
# Tile selection
# ---------------------------------------------------------------------------
def _select_tiles(B, N, K, itemsize, budget_bytes):
    sub = 16 if itemsize < 4 else 8          # bf16 packs 2 rows per sublane
    np_lane = _round_up(N, 128)
    kp_lane = _round_up(K, 128)
    tm = min(512, _round_up(B, sub))

    def working_set(tm, tn, tk, kgrid):
        b = 2 * tm * tk * itemsize           # x tile, double-buffered
        b += 2 * tk * tn * itemsize          # W tile, double-buffered (conservative)
        b += 2 * tm * tn * itemsize          # out tile, double-buffered
        b += 2 * 128 * 4                     # bias (negligible)
        if kgrid > 1:
            b += tm * tn * 4                 # f32 accumulator scratch
        return b

    # Preferred: weight fully VMEM-resident -> K grid of 1, W fetched once.
    tn, tk = np_lane, kp_lane
    if working_set(tm, tn, tk, 1) <= budget_bytes:
        # v7x has 2 TensorCores: if the batch axis has a single tile, split N so
        # both cores get a parallel tile (still 1x total W traffic).
        if _cdiv(B, tm) == 1 and np_lane >= 256:
            tn = _round_up(np_lane // 2, 128)
        return tm, tn, tk

    # Fallback for large D: big tiles over a 3-D (M, N, K) grid, K last.
    tn = min(512, np_lane)
    tk = min(2048, kp_lane)
    while working_set(tm, tn, tk, _cdiv(K, tk)) > budget_bytes and tk > 512:
        tk = max(512, _round_up(tk // 2, 128))
    while working_set(tm, tn, tk, _cdiv(K, tk)) > budget_bytes and tn > 128:
        tn = max(128, _round_up(tn // 2, 128))
    while working_set(tm, tn, tk, _cdiv(K, tk)) > budget_bytes and tm > sub:
        tm = max(sub, _round_up(tm // 2, sub))
    return tm, tn, tk


# ---------------------------------------------------------------------------
# Wrapper
# ---------------------------------------------------------------------------
def affine_transform(x, weight, bias, *, compute_dtype=None,
                     vmem_budget_bytes=40 * 1024 * 1024):
    """y = x @ weight.T + bias  (nn.Linear forward).

    x:      (B, D)
    weight: (D, D)   (out_features, in_features) — PyTorch convention
    bias:   (D,)
    """
    B, K = x.shape
    N, K2 = weight.shape
    assert K == K2, "weight in_features must match x feature dim"

    out_dtype = x.dtype
    if compute_dtype is not None:
        x = x.astype(compute_dtype)
        weight = weight.astype(compute_dtype)
    itemsize = jnp.dtype(x.dtype).itemsize

    tm, tn, tk = _select_tiles(B, N, K, itemsize, vmem_budget_bytes)

    # One-time transpose to (in, out): canonical MXU RHS layout for jnp.dot,
    # avoids any per-step XLU transpose of the weight tile inside the kernel.
    w_t = weight.T

    # Zero-pad ONLY the contraction (K) dim — required so padded K elements
    # contribute 0 to the reduction. Ragged M/N are handled by masked stores.
    kp = _round_up(K, tk)
    if kp != K:
        x = jnp.pad(x, ((0, 0), (0, kp - K)))
        w_t = jnp.pad(w_t, ((0, kp - K), (0, 0)))

    b2 = bias.reshape(1, N).astype(jnp.float32)

    gm = _cdiv(B, tm)
    gn = _cdiv(N, tn)
    gk = kp // tk

    vmem_limit = min(56 * 1024 * 1024, vmem_budget_bytes + 16 * 1024 * 1024)

    if gk == 1:
        # Common (weight-resident) path: constant W block index across the grid
        # when gn == 1 -> W is DMA'd from HBM exactly once.
        return pl.pallas_call(
            _affine_kernel_fused,
            out_shape=jax.ShapeDtypeStruct((B, N), out_dtype),
            grid=(gm, gn),
            in_specs=[
                pl.BlockSpec((tm, tk), lambda i, j: (i, 0)),   # x tile
                pl.BlockSpec((tk, tn), lambda i, j: (0, j)),   # W.T tile (in, out)
                pl.BlockSpec((1, tn), lambda i, j: (0, j)),    # bias tile
            ],
            out_specs=pl.BlockSpec((tm, tn), lambda i, j: (i, j)),
            compiler_params=pltpu.CompilerParams(
                dimension_semantics=("parallel", "parallel"),
                vmem_limit_bytes=vmem_limit,
            ),
        )(x, w_t, b2)

    return pl.pallas_call(
        _affine_kernel_acc,
        out_shape=jax.ShapeDtypeStruct((B, N), out_dtype),
        grid=(gm, gn, gk),                                     # reduction last
        in_specs=[
            pl.BlockSpec((tm, tk), lambda i, j, k: (i, k)),    # x tile
            pl.BlockSpec((tk, tn), lambda i, j, k: (k, j)),    # W.T tile
            pl.BlockSpec((1, tn), lambda i, j, k: (0, j)),     # bias tile
        ],
        out_specs=pl.BlockSpec((tm, tn), lambda i, j, k: (i, j)),
        scratch_shapes=[pltpu.VMEM((tm, tn), jnp.float32)],
        compiler_params=pltpu.CompilerParams(
            dimension_semantics=("parallel", "parallel", "arbitrary"),
            vmem_limit_bytes=vmem_limit,
        ),
    )(x, w_t, b2)


# ---------------------------------------------------------------------------
# Demo / correctness check
# ---------------------------------------------------------------------------
if __name__ == "__main__":
    key = jax.random.PRNGKey(0)
    kx, kw, kb = jax.random.split(key, 3)

    batch = 8
    input_dim = 32

    x = jax.random.normal(kx, (batch, input_dim), dtype=jnp.float32)
    # nn.Linear-style uniform(-1/sqrt(D), 1/sqrt(D)) init (deterministic here).
    bound = 1.0 / jnp.sqrt(jnp.float32(input_dim))
    weight = jax.random.uniform(kw, (input_dim, input_dim), dtype=jnp.float32,
                                minval=-bound, maxval=bound)
    bias = jax.random.uniform(kb, (input_dim,), dtype=jnp.float32,
                              minval=-bound, maxval=bound)

    affine = jax.jit(functools.partial(affine_transform))
    y = affine(x, weight, bias)
    y = jax.block_until_ready(y)

    y_ref = x @ weight.T + bias
    assert y.shape == y_ref.shape, "shape mismatch vs reference"
    assert jnp.allclose(y, y_ref, atol=1e-5, rtol=1e-5), "mismatch vs reference"

    # Second small config: exercises the split-N (2 parallel N tiles) path.
    d2, b2n = 256, 16
    k2x, k2w, k2b = jax.random.split(jax.random.PRNGKey(1), 3)
    x2 = jax.random.normal(k2x, (b2n, d2), dtype=jnp.float32)
    w2 = jax.random.normal(k2w, (d2, d2), dtype=jnp.float32) * 0.05
    bi2 = jax.random.normal(k2b, (d2,), dtype=jnp.float32) * 0.05
    y2 = jax.block_until_ready(jax.jit(affine_transform)(x2, w2, bi2))
    y2_ref = x2 @ w2.T + bi2
    assert jnp.allclose(y2, y2_ref, atol=1e-4, rtol=1e-4), "mismatch (split-N path)"

    print("KERNEL_OK")
</pallas_src>

<mosaic_0001>
module attributes {stable_mosaic.version = 11 : i64} {
  func.func @_affine_kernel_fused(%arg0: i32, %arg1: i32, %arg2: memref<8x128xf32, #tpu.memory_space<vmem>>, %arg3: memref<128x128xf32, #tpu.memory_space<vmem>>, %arg4: memref<1x128xf32, #tpu.memory_space<vmem>>, %arg5: memref<8x128xf32, #tpu.memory_space<vmem>>) attributes {dimension_semantics = [#tpu.dimension_semantics<parallel>, #tpu.dimension_semantics<parallel>], iteration_bounds = array<i64: 1, 1>, scalar_prefetch = 0 : i64, scratch_operands = 0 : i64, tpu.core_type = #tpu.core_type<tc>, window_params = [{transform_indices = @transform_0, window_bounds = array<i64: 8, 128>}, {transform_indices = @transform_1, window_bounds = array<i64: 128, 128>}, {transform_indices = @transform_2, window_bounds = array<i64: 1, 128>}, {transform_indices = @transform_3, window_bounds = array<i64: 8, 128>}]} {
    %c0 = arith.constant 0 : index
    %c0_0 = arith.constant 0 : index
    %0 = vector.load %arg2[%c0, %c0_0] : memref<8x128xf32, #tpu.memory_space<vmem>>, vector<8x128xf32>
    %c0_1 = arith.constant 0 : index
    %c0_2 = arith.constant 0 : index
    %1 = vector.load %arg3[%c0_1, %c0_2] : memref<128x128xf32, #tpu.memory_space<vmem>>, vector<128x128xf32>
    %cst = arith.constant dense<0.000000e+00> : vector<8x128xf32>
    %2 = tpu.matmul %0, %1, %cst {dimension_numbers = #tpu.dot_dimension_numbers<[1], [0], [0], [1], [0, 0, 1, 1], [], []>} : vector<8x128xf32>, vector<128x128xf32>, vector<8x128xf32> -> vector<8x128xf32>
    %c0_3 = arith.constant 0 : index
    %c0_4 = arith.constant 0 : index
    %3 = vector.load %arg4[%c0_3, %c0_4] : memref<1x128xf32, #tpu.memory_space<vmem>>, vector<1x128xf32>
    %4 = vector.broadcast %3 : vector<1x128xf32> to vector<8x128xf32>
    %5 = arith.addf %2, %4 : vector<8x128xf32>
    %c0_5 = arith.constant 0 : index
    %c0_6 = arith.constant 0 : index
    %6 = vector.load %arg5[%c0_5, %c0_6] : memref<8x128xf32, #tpu.memory_space<vmem>>, vector<8x128xf32>
    tpu.vector_store %arg5[%c0_5, %c0_6], %5 {strides = array<i32>} : memref<8x128xf32, #tpu.memory_space<vmem>>, vector<8x128xf32>,
    return
  }
  func.func @transform_0(%arg0: i32, %arg1: i32) -> (i32, i32) {
    %c0_i32 = arith.constant 0 : i32
    %c0_i32_0 = arith.constant 0 : i32
    return %arg0, %c0_i32 : i32, i32
  }
  func.func @transform_1(%arg0: i32, %arg1: i32) -> (i32, i32) {
    %c0_i32 = arith.constant 0 : i32
    %c0_i32_0 = arith.constant 0 : i32
    return %c0_i32, %arg1 : i32, i32
  }
  func.func @transform_2(%arg0: i32, %arg1: i32) -> (i32, i32) {
    %c0_i32 = arith.constant 0 : i32
    %c0_i32_0 = arith.constant 0 : i32
    return %c0_i32, %arg1 : i32, i32
  }
  func.func @transform_3(%arg0: i32, %arg1: i32) -> (i32, i32) {
    %c0_i32 = arith.constant 0 : i32
    return %arg0, %arg1 : i32, i32
  }
}

</mosaic_0001>

<bundles_post_ra>
// kernel: affine_transform.1
= control target key start
LH: loop header
LB: loop body
LE: loop exit
PB: predicated region body
PF: predicated region fallthrough
CT: control target
= control target key end

     0   :  { %v202_v1 = vmov 0.0   ;;  %vm203_vm0 = vmmov 0   ;;  %s282_s0 = inlined_call_operand.vmem [shape: f32[8,128], index: 0, kind: input, shape index: {}]   ;;  %s283_s1 = inlined_call_operand.vmem [shape: f32[128,32], index: 1, kind: input, shape index: {}]   ;;  %s284_s2 = inlined_call_operand.vmem [shape: f32[1,32], index: 2, kind: input, shape index: {}]   ;;  %s285_s3 = inlined_call_operand.hbm [shape: f32[8,32], index: 3, kind: output, shape index: {}]  }
   0x1   :  { %v31_v0 = vld [vmem:[%s283_s1 + $0x78] sm:$0xff]  ;;  %142 = vmatprep.subr.mxu0 %v202_v1  ;;  %v30_v2 = vld [vmem:[%s283_s1 + $0x70] sm:$0xff]  ;;  %174 = vmatprep.mubr.msk.f32.mxu0 %vm203_vm0, %v202_v1  ;;  %v29_v3 = vld [vmem:[%s283_s1 + $0x68] sm:$0xff] }
   0x2   :  { %143 = vmatpush3.msra.mxu0 %v31_v0  ;;  %v28_v4 = vld [vmem:[%s283_s1 + $0x60] sm:$0xff] }
   0x3   :  { %144 = vmatprep.subr.mxu0 %v202_v1 }
   0x4   :  { %145 = vmatpush3.msra.mxu0 %v30_v2 }
   0x5   :  { %146 = vmatprep.subr.mxu0 %v202_v1 }
   0x6   :  { %147 = vmatpush3.msra.mxu0 %v29_v3 }
   0x7   :  { %8 = vsyncpa [#allocation3], 0  ;;  %148 = vmatprep.subr.mxu0 %v202_v1  ;;  %v27_v5 = vld [vmem:[%s283_s1 + $0x58] sm:$0xff]  ;;  %v26_v6 = vld [vmem:[%s283_s1 + $0x50] sm:$0xff]  ;;  %s204_s21 = smov [#allocation2]  }
   0x8   :  { %149 = vmatpush3.msra.mxu0 %v28_v4  ;;  %v25_v7 = vld [vmem:[%s283_s1 + $0x48] sm:$0xff]  ;;  %v24_v8 = vld [vmem:[%s283_s1 + $0x40] sm:$0xff]  ;;  %v23_v9 = vld [vmem:[%s283_s1 + $0x38] sm:$0xff]  ;;  %s116_s22 = sshll.u32 %s204_s21, 4  ;;  %s117_s22 = int_to_ptr.vmem [resolvable:$true] %s116_s22 }
   0x9   :  { %150 = vmatprep.subr.mxu0 %v202_v1  ;;  %v22_v10 = vld [vmem:[%s283_s1 + $0x30] sm:$0xff]  ;;  %v21_v11 = vld [vmem:[%s283_s1 + $0x28] sm:$0xff]  ;;  %v20_v12 = vld [vmem:[%s283_s1 + $0x20] sm:$0xff]  ;;  %p185_p1 = scmp.lt.s32.totalorder %s117_s22, %s117_s22 }
   0xa   :  { %151 = vmatpush3.msra.mxu0 %v27_v5  ;;  %v19_v13 = vld [vmem:[%s283_s1 + $0x18] sm:$0xff]  ;;  %v18_v14 = vld [vmem:[%s283_s1 + $0x10] sm:$0xff]  ;;  %v17_v15 = vld [vmem:[%s283_s1 + $0x8] sm:$0xff] }
   0xb   :  { %152 = vmatprep.subr.mxu0 %v202_v1  ;;  %v16_v16 = vld [vmem:[%s283_s1] sm:$0xff]  ;;  %s180_s1 = scalar_lea.vmem %s117_s22, 128 }
   0xc   :  { %153 = vmatpush3.msra.mxu0 %v26_v6  ;;  %v15_v17 = vld [vmem:[%s282_s0] sm:$0xff]  ;;  %p181_p0 = scmp.ne.s32.totalorder %s117_s22, %s180_s1  ;;  %p186_p2 = scmp.lt.s32.totalorder %s180_s1, %s180_s1 }
   0xd   :  { %154 = vmatprep.subr.mxu0 %v202_v1  ;;  %v124_v18 = vld [vmem:[%s284_s2] ss:$0 sm:$0xff] }
   0xe   :  { %155 = vmatpush3.msra.mxu0 %v25_v7  ;;  %p187_p3 = por %p186_p2, %p185_p1 }
   0xf   :  { %156 = vmatprep.subr.mxu0 %v202_v1 }
  0x10   :  { %157 = vmatpush3.msra.mxu0 %v24_v8  ;;  %p188_p4 = pnand %p187_p3, %p181_p0 }
  0x11   :  { %158 = vmatprep.subr.mxu0 %v202_v1 }
  0x12   :  { %159 = vmatpush3.msra.mxu0 %v23_v9 }
  0x13   :  { %160 = vmatprep.subr.mxu0 %v202_v1 }
  0x14   :  { %161 = vmatpush3.msra.mxu0 %v22_v10 }
  0x15   :  { %162 = vmatprep.subr.mxu0 %v202_v1 }
  0x16   :  { %163 = vmatpush3.msra.mxu0 %v21_v11 }
  0x17   :  { %164 = vmatprep.subr.mxu0 %v202_v1 }
  0x18   :  { %165 = vmatpush3.msra.mxu0 %v20_v12 }
  0x19   :  { %166 = vmatprep.subr.mxu0 %v202_v1 }
  0x1a   :  { %167 = vmatpush3.msra.mxu0 %v19_v13 }
  0x1b   :  { %168 = vmatprep.subr.mxu0 %v202_v1 }
  0x1c   :  { %169 = vmatpush3.msra.mxu0 %v18_v14 }
  0x1d   :  { %170 = vmatprep.subr.mxu0 %v202_v1 }
  0x1e   :  { %171 = vmatpush3.msra.mxu0 %v17_v15 }
  0x1f   :  { %172 = vmatprep.subr.mxu0 %v202_v1 }
  0x20   :  { %173 = vmatpush3.msra.mxu0 %v16_v16 }
  0x21   :  { %175 = vmatmul.mubr.f32.vlgmr.msra.gmra.mxu0 %v15_v17 }
  0xe1   :  { %v105_v19 = vpop.f32.mrf.mxu0 }
  0xe2   :  { %v106_v20 = vadd.f32 %v124_v18, %v105_v19 }
  0xe3   :  { %v176_v21 = vpop.f32.mrf.mxu0 }
  0xe4   :  { %109 = vst [vmem:[#allocation2] sm:$0xff] %v106_v20 }
  0xe5   :  { %191 = shalt.err (!%p188_p4)
}
  0xe6   :  { %119 = dma.vmem_to_hbm [thread:$0]  %s117_s22, 128, %s285_s3, [#allocation3]  }
  0xe7   :  { %200 = dma.done.wait [#allocation3], 128  }
  0xe8   :  { %201 = vsyncadd [#allocation3], 4294967168 }
  0xe9   :  { %123 = vsyncpa [#allocation3], 1 }

</bundles_post_ra>
